<compile_context>
chip_gen: v7x
topology: tpu7x:2x2x1
jax: 0.10.0
libtpu: 0.0.40
codegen_flags: <defaults>
</compile_context>

<pallas_src>
import functools

import jax
import jax.numpy as jnp
from jax.experimental import pallas as pl
from jax.experimental.pallas import tpu as pltpu


LANE = 128     # TPU lane width (last dim)
SUBLANE = 8    # f32 sublane granularity (second-to-last dim)


def _round_up(x: int, m: int) -> int:
    return ((x + m - 1) // m) * m


def _pick_tile_b(b_padded: int, k_padded: int, vmem_budget_bytes: int = 16 << 20) -> int:
    """Choose the batch tile.

    Big enough to amortize the ~0.35 us per-grid-step overhead, small enough
    that the double-buffered f32 x tile (2 * tile_b * K * 4 B) stays well under
    the scoped-VMEM default on every generation (v7x has only 64 MiB physical).
    """
    cap = (vmem_budget_bytes // (2 * k_padded * 4)) // SUBLANE * SUBLANE
    cap = max(SUBLANE, min(1024, cap))
    tile_b = min(cap, b_padded)
    # Prefer >= 2 grid steps so "parallel" batch semantics can split the work
    # across v7x's two TensorCores when the batch is large enough.
    if tile_b == b_padded and b_padded >= 2 * SUBLANE:
        tile_b = _round_up(b_padded // 2, SUBLANE)
    return tile_b


def prepare_params(w1, b1, w2, b2):
    """Pad / cast parameters ONCE (call at parameter-load time, not per step).

    w1: [input_size, hidden]   b1: [hidden] or [1, hidden]
    w2: [hidden, num_classes]  b2: [num_classes] or [1, num_classes]
    """
    K, hidden = w1.shape
    num_classes = w2.shape[1]
    K_p = _round_up(K, LANE)
    H_p = _round_up(hidden, LANE)
    C_p = _round_up(num_classes, LANE)

    w1_p = jnp.zeros((K_p, H_p), jnp.bfloat16).at[:K, :hidden].set(
        w1.astype(jnp.bfloat16))
    b1_p = jnp.zeros((1, H_p), jnp.float32).at[:, :hidden].set(
        b1.reshape(1, -1).astype(jnp.float32))
    w2_p = jnp.zeros((H_p, C_p), jnp.bfloat16).at[:hidden, :num_classes].set(
        w2.astype(jnp.bfloat16))
    # Padded class lanes carry -1e30 so they drop out of the logsumexp; the
    # wrapper always slices the output back to [:, :num_classes].
    b2_p = jnp.full((1, C_p), -1e30, jnp.float32).at[:, :num_classes].set(
        b2.reshape(1, -1).astype(jnp.float32))

    return {"w1": w1_p, "b1": b1_p, "w2": w2_p, "b2": b2_p,
            "num_classes": num_classes, "input_size": K}


def mlp_kernel(x_ref, w1_ref, b1_ref, w2_ref, b2_ref, o_ref):
    # x arrives from HBM in f32; cast to bf16 on the VPU for the MXU
    # (the HBM stream is f32 either way, so casting in-kernel avoids a
    # separate pad/convert round trip in HBM).
    x = x_ref[...].astype(w1_ref.dtype)                          # (TB, K_p) bf16
    h = jnp.dot(x, w1_ref[...], preferred_element_type=jnp.float32)
    h = jnp.maximum(h + b1_ref[...], 0.0)                        # (TB, H_p) f32

    # fc2: bf16 MXU inputs, f32 accumulation.
    logits = jnp.dot(h.astype(w2_ref.dtype), w2_ref[...],
                     preferred_element_type=jnp.float32)
    logits = logits + b2_ref[...]                                # (TB, C_p) f32

    # Numerically stable log_softmax along the last (lane) axis.
    m = jnp.max(logits, axis=-1, keepdims=True)
    s = logits - m
    lse = jnp.log(jnp.sum(jnp.exp(s), axis=-1, keepdims=True))
    o_ref[...] = (s - lse).astype(o_ref.dtype)


@functools.partial(jax.jit, static_argnames=("num_classes", "tile_b"))
def _forward_impl(x_nchw, w1_p, b1_p, w2_p, b2_p, *, num_classes, tile_b):
    B = x_nchw.shape[0]
    x_flat = x_nchw.reshape(B, -1).astype(jnp.float32)           # x.view(B, -1)
    K = x_flat.shape[1]
    K_p, H_p = w1_p.shape
    C_p = w2_p.shape[1]

    # Pad only to sublane / tile granularity (and only if actually needed).
    B_pp = _round_up(_round_up(max(B, 1), SUBLANE), tile_b)
    if (B_pp, K_p) != (B, K):
        x_flat = jnp.zeros((B_pp, K_p), jnp.float32).at[:B, :K].set(x_flat)

    grid = (B_pp // tile_b,)

    out = pl.pallas_call(
        mlp_kernel,
        out_shape=jax.ShapeDtypeStruct((B_pp, C_p), jnp.float32),
        grid_spec=pltpu.PrefetchScalarGridSpec(
            num_scalar_prefetch=0,
            grid=grid,
            in_specs=[
                # x: streamed per batch tile (double-buffered by Pallas).
                pl.BlockSpec((tile_b, K_p), lambda i: (i, 0)),
                # Weights / biases: constant index_map -> VMEM-resident.
                pl.BlockSpec((K_p, H_p), lambda i: (0, 0)),
                pl.BlockSpec((1, H_p), lambda i: (0, 0)),
                pl.BlockSpec((H_p, C_p), lambda i: (0, 0)),
                pl.BlockSpec((1, C_p), lambda i: (0, 0)),
            ],
            out_specs=pl.BlockSpec((tile_b, C_p), lambda i: (i, 0)),
        ),
        compiler_params=pltpu.CompilerParams(
            dimension_semantics=("parallel",),
        ),
    )(x_flat, w1_p, b1_p, w2_p, b2_p)

    # Strip batch / class padding.
    return out[:B, :num_classes]


def simple_neural_net_forward(x_nchw, params):
    """Forward pass of SimpleNeuralNet using pre-padded params (prepare_params)."""
    B = x_nchw.shape[0]
    K_p = params["w1"].shape[0]
    B_p = _round_up(max(B, 1), SUBLANE)
    tile_b = _pick_tile_b(B_p, K_p)
    return _forward_impl(x_nchw, params["w1"], params["b1"],
                         params["w2"], params["b2"],
                         num_classes=params["num_classes"], tile_b=tile_b)


if __name__ == "__main__":
    # Small shapes consistent with the module's forward.
    B, C, H, W = 2, 4, 16, 16
    input_size = C * H * W          # 1024
    hidden_size = 32
    num_classes = 10

    key = jax.random.PRNGKey(0)
    kx, kw1, kb1, kw2, kb2 = jax.random.split(key, 5)

    x = jax.random.normal(kx, (B, C, H, W), dtype=jnp.float32)

    # Deterministic parameter init (uniform, like torch default scale).
    lim1 = 1.0 / (input_size ** 0.5)
    w1 = jax.random.uniform(kw1, (input_size, hidden_size), jnp.float32, -lim1, lim1)
    b1 = jax.random.uniform(kb1, (1, hidden_size), jnp.float32, -lim1, lim1)
    lim2 = 1.0 / (hidden_size ** 0.5)
    w2 = jax.random.uniform(kw2, (hidden_size, num_classes), jnp.float32, -lim2, lim2)
    b2 = jax.random.uniform(kb2, (1, num_classes), jnp.float32, -lim2, lim2)

    # Pad / cast parameters once (hoisted out of the per-call path).
    params = prepare_params(w1, b1, w2, b2)
    jax.block_until_ready(params)

    out = simple_neural_net_forward(x, params)
    jax.block_until_ready(out)

    # Pure-JAX f32 reference (bf16 MXU inputs in the kernel -> loose tol).
    x_flat = x.reshape(B, -1)
    h_ref = jnp.maximum(x_flat @ w1 + b1, 0.0)
    logits_ref = h_ref @ w2 + b2
    ref = jax.nn.log_softmax(logits_ref, axis=-1)

    row_sums = jnp.sum(jnp.exp(out), axis=-1)
    assert out.shape == (B, num_classes)
    assert jnp.allclose(row_sums, 1.0, atol=1e-5)
    assert jnp.max(jnp.abs(out - ref)) < 5e-2

    print("KERNEL_OK")
</pallas_src>

<mosaic_0001>
module attributes {stable_mosaic.version = 11 : i64} {
  func.func @mlp_kernel(%arg0: i32, %arg1: memref<8x1024xf32, #tpu.memory_space<vmem>>, %arg2: memref<1024x128xbf16, #tpu.memory_space<vmem>>, %arg3: memref<1x128xf32, #tpu.memory_space<vmem>>, %arg4: memref<128x128xbf16, #tpu.memory_space<vmem>>, %arg5: memref<1x128xf32, #tpu.memory_space<vmem>>, %arg6: memref<8x128xf32, #tpu.memory_space<vmem>>) attributes {dimension_semantics = [#tpu.dimension_semantics<parallel>], iteration_bounds = array<i64: 1>, scalar_prefetch = 0 : i64, scratch_operands = 0 : i64, tpu.core_type = #tpu.core_type<tc>, window_params = [{transform_indices = @transform_0, window_bounds = array<i64: 8, 1024>}, {pipeline_mode = #tpu.pipeline_mode<synchronous>, transform_indices = @transform_1, window_bounds = array<i64: 1024, 128>}, {pipeline_mode = #tpu.pipeline_mode<synchronous>, transform_indices = @transform_2, window_bounds = array<i64: 1, 128>}, {pipeline_mode = #tpu.pipeline_mode<synchronous>, transform_indices = @transform_3, window_bounds = array<i64: 128, 128>}, {pipeline_mode = #tpu.pipeline_mode<synchronous>, transform_indices = @transform_4, window_bounds = array<i64: 1, 128>}, {transform_indices = @transform_5, window_bounds = array<i64: 8, 128>}]} {
    %c0 = arith.constant 0 : index
    %c0_0 = arith.constant 0 : index
    %0 = vector.load %arg1[%c0, %c0_0] : memref<8x1024xf32, #tpu.memory_space<vmem>>, vector<8x1024xf32>
    %1 = arith.truncf %0 : vector<8x1024xf32> to vector<8x1024xbf16>
    %c0_1 = arith.constant 0 : index
    %c0_2 = arith.constant 0 : index
    %2 = vector.load %arg2[%c0_1, %c0_2] : memref<1024x128xbf16, #tpu.memory_space<vmem>>, vector<1024x128xbf16>
    %cst = arith.constant dense<0.000000e+00> : vector<8x128xf32>
    %3 = tpu.matmul %1, %2, %cst {dimension_numbers = #tpu.dot_dimension_numbers<[1], [0], [0], [1], [0, 0, 1, 1], [], []>} : vector<8x1024xbf16>, vector<1024x128xbf16>, vector<8x128xf32> -> vector<8x128xf32>
    %c0_3 = arith.constant 0 : index
    %c0_4 = arith.constant 0 : index
    %4 = vector.load %arg3[%c0_3, %c0_4] : memref<1x128xf32, #tpu.memory_space<vmem>>, vector<1x128xf32>
    %5 = vector.broadcast %4 : vector<1x128xf32> to vector<8x128xf32>
    %6 = arith.addf %3, %5 : vector<8x128xf32>
    %cst_5 = arith.constant 0.000000e+00 : f32
    %7 = vector.broadcast %cst_5 : f32 to vector<8x128xf32>
    %8 = arith.maximumf %6, %7 : vector<8x128xf32>
    %9 = arith.truncf %8 : vector<8x128xf32> to vector<8x128xbf16>
    %c0_6 = arith.constant 0 : index
    %c0_7 = arith.constant 0 : index
    %10 = vector.load %arg4[%c0_6, %c0_7] : memref<128x128xbf16, #tpu.memory_space<vmem>>, vector<128x128xbf16>
    %cst_8 = arith.constant dense<0.000000e+00> : vector<8x128xf32>
    %11 = tpu.matmul %9, %10, %cst_8 {dimension_numbers = #tpu.dot_dimension_numbers<[1], [0], [0], [1], [0, 0, 1, 1], [], []>} : vector<8x128xbf16>, vector<128x128xbf16>, vector<8x128xf32> -> vector<8x128xf32>
    %c0_9 = arith.constant 0 : index
    %c0_10 = arith.constant 0 : index
    %12 = vector.load %arg5[%c0_9, %c0_10] : memref<1x128xf32, #tpu.memory_space<vmem>>, vector<1x128xf32>
    %13 = vector.broadcast %12 : vector<1x128xf32> to vector<8x128xf32>
    %14 = arith.addf %11, %13 : vector<8x128xf32>
    %cst_11 = arith.constant dense<0xFF800000> : vector<8xf32>
    %15 = vector.multi_reduction <maximumf>, %14, %cst_11 [1] : vector<8x128xf32> to vector<8xf32>
    %16 = vector.shape_cast %15 : vector<8xf32> to vector<8x1xf32>
    %17 = vector.broadcast %16 : vector<8x1xf32> to vector<8x128xf32>
    %18 = arith.subf %14, %17 : vector<8x128xf32>
    %19 = math.exp %18 : vector<8x128xf32>
    %cst_12 = arith.constant dense<0.000000e+00> : vector<8xf32>
    %20 = vector.multi_reduction <add>, %19, %cst_12 [1] : vector<8x128xf32> to vector<8xf32>
    %21 = vector.shape_cast %20 : vector<8xf32> to vector<8x1xf32>
    %22 = math.log %21 : vector<8x1xf32>
    %23 = vector.broadcast %22 : vector<8x1xf32> to vector<8x128xf32>
    %24 = arith.subf %18, %23 : vector<8x128xf32>
    %c0_13 = arith.constant 0 : index
    %c0_14 = arith.constant 0 : index
    %25 = vector.load %arg6[%c0_13, %c0_14] : memref<8x128xf32, #tpu.memory_space<vmem>>, vector<8x128xf32>
    tpu.vector_store %arg6[%c0_13, %c0_14], %24 {strides = array<i32>} : memref<8x128xf32, #tpu.memory_space<vmem>>, vector<8x128xf32>,
    return
  }
  func.func @transform_0(%arg0: i32) -> (i32, i32) {
    %c0_i32 = arith.constant 0 : i32
    %c0_i32_0 = arith.constant 0 : i32
    return %arg0, %c0_i32 : i32, i32
  }
  func.func @transform_1(%arg0: i32) -> (i32, i32) {
    %c0_i32 = arith.constant 0 : i32
    %c0_i32_0 = arith.constant 0 : i32
    %c0_i32_1 = arith.constant 0 : i32
    return %c0_i32, %c0_i32_0 : i32, i32
  }
  func.func @transform_2(%arg0: i32) -> (i32, i32) {
    %c0_i32 = arith.constant 0 : i32
    %c0_i32_0 = arith.constant 0 : i32
    %c0_i32_1 = arith.constant 0 : i32
    return %c0_i32, %c0_i32_0 : i32, i32
  }
  func.func @transform_3(%arg0: i32) -> (i32, i32) {
    %c0_i32 = arith.constant 0 : i32
    %c0_i32_0 = arith.constant 0 : i32
    %c0_i32_1 = arith.constant 0 : i32
    return %c0_i32, %c0_i32_0 : i32, i32
  }
  func.func @transform_4(%arg0: i32) -> (i32, i32) {
    %c0_i32 = arith.constant 0 : i32
    %c0_i32_0 = arith.constant 0 : i32
    %c0_i32_1 = arith.constant 0 : i32
    return %c0_i32, %c0_i32_0 : i32, i32
  }
  func.func @transform_5(%arg0: i32) -> (i32, i32) {
    %c0_i32 = arith.constant 0 : i32
    %c0_i32_0 = arith.constant 0 : i32
    return %arg0, %c0_i32 : i32, i32
  }
}

</mosaic_0001>

<bundles_post_ra>
// kernel: _forward_impl.1
= control target key start
LH: loop header
LB: loop body
LE: loop exit
PB: predicated region body
PF: predicated region fallthrough
CT: control target
= control target key end

     0   :  { %10 = vsyncpa [#allocation3], 0  ;;  %s1155_s18 = smov [#allocation2]   ;;  %s1259_s0 = inlined_call_operand.vmem [shape: f32[8,1024], index: 0, kind: input, shape index: {}]   ;;  %s1260_s1 = inlined_call_operand.hbm [shape: bf16[1024,128], index: 1, kind: input, shape index: {}]   ;;  %s1261_s2 = inlined_call_operand.vmem [shape: f32[1,128], index: 2, kind: input, shape index: {}]   ;;  %s1262_s3 = inlined_call_operand.vmem [shape: bf16[128,128], index: 3, kind: input, shape index: {}]   ;;  %s1263_s4 = inlined_call_operand.vmem [shape: f32[1,128], index: 4, kind: input, shape index: {}]   ;;  %s1264_s5 = inlined_call_operand.vmem [shape: f32[8,128], index: 5, kind: output, shape index: {}]  }
   0x1   :  { %s18_s19 = sshll.u32 %s1155_s18, 4  ;;  %s1131_s22 = scalar_lea.hbm %s1260_s1, 8192  ;;  %s19_s19 = int_to_ptr.vmem [resolvable:$true] %s18_s19 }
   0x2   :  { %p1132_p0 = scmp.ne.s32.totalorder %s1260_s1, %s1131_s22  ;;  %p1135_p1 = scmp.lt.u32.totalorder %s1131_s22, %s1260_s1 }
   0x4   :  { %p1137_p2 = pnand %p1135_p1, %p1132_p0 }
   0x6   :  { %1140 = shalt.err (!%p1137_p2)
}
   0x7   :  { %s1141_s27 = scalar_lea.vmem %s19_s19, 8192  ;;  %p1146_p4 = scmp.lt.s32.totalorder %s19_s19, %s19_s19 }
   0x8   :  { %p1142_p3 = scmp.ne.s32.totalorder %s19_s19, %s1141_s27  ;;  %p1147_p5 = scmp.lt.s32.totalorder %s1141_s27, %s1141_s27 }
   0xa   :  { %p1148_p6 = por %p1147_p5, %p1146_p4 }
   0xc   :  { %p1149_p7 = pnand %p1148_p6, %p1142_p3 }
   0xe   :  { %1152 = shalt.err (!%p1149_p7)
}
   0xf   :  { %s1156_s28 = smov 64   ;;  %s1157_s29 = smov 4  }
  0x10   :  { %24 = dma.hbm_to_vmem [thread:$0]  %s1260_s1, 8192, %s19_s19, [#allocation3], %s1156_s28, %s1156_s28, %s1157_s29  }
  0x11   :  { %1153 = dma.done.wait [#allocation3], 8192  }
  0x12   :  { %1154 = vsyncadd [#allocation3], 4294959104  ;;  %v1055_v0 = vld [vmem:[#allocation2 + $0x40] sm:$0xff]   ;;  %v1059_v4 = vld [vmem:[#allocation2 + $0x48] sm:$0xff]   ;;  %vm1159_vm0 = vmmov 0  }
  0x13   :  { %v1056_v1 = vld [vmem:[#allocation2 + $0xc0] sm:$0xff]   ;;  %933 = vmatprep.subr.bf16.mxu0 %v1055_v0  ;;  %v1060_v5 = vld [vmem:[#allocation2 + $0xc8] sm:$0xff]   ;;  %v1063_v8 = vld [vmem:[#allocation2 + $0x50] sm:$0xff]  }
  0x14   :  { %v1057_v2 = vld [vmem:[#allocation2] sm:$0xff]   ;;  %955 = vmatprep.subr.bf16.mxu1 %v1056_v1  ;;  %v1061_v6 = vld [vmem:[#allocation2 + $0x8] sm:$0xff]   ;;  %v1064_v9 = vld [vmem:[#allocation2 + $0xd0] sm:$0xff]  }
  0x15   :  { %v1058_v3 = vld [vmem:[#allocation2 + $0x80] sm:$0xff]   ;;  %934 = vmatpush3.bf16.msra.mxu0 %v1057_v2  ;;  %v1062_v7 = vld [vmem:[#allocation2 + $0x88] sm:$0xff]   ;;  %v1065_v10 = vld [vmem:[#allocation2 + $0x10] sm:$0xff]  }
  0x16   :  { %956 = vmatpush3.bf16.msra.mxu1 %v1058_v3  ;;  %935 = vmatprep.subr.bf16.mxu0 %v1059_v4  ;;  %v1066_v11 = vld [vmem:[#allocation2 + $0x90] sm:$0xff]   ;;  %v1067_v12 = vld [vmem:[#allocation2 + $0x58] sm:$0xff]   ;;  %v1071_v16 = vld [vmem:[#allocation2 + $0x60] sm:$0xff]  }
  0x17   :  { %957 = vmatprep.subr.bf16.mxu1 %v1060_v5  ;;  %v1068_v13 = vld [vmem:[#allocation2 + $0xd8] sm:$0xff]   ;;  %v1072_v17 = vld [vmem:[#allocation2 + $0xe0] sm:$0xff]   ;;  %v1075_v20 = vld [vmem:[#allocation2 + $0x68] sm:$0xff]  }
  0x18   :  { %v1069_v14 = vld [vmem:[#allocation2 + $0x18] sm:$0xff]   ;;  %v1073_v18 = vld [vmem:[#allocation2 + $0x20] sm:$0xff]   ;;  %v1076_v21 = vld [vmem:[#allocation2 + $0xe8] sm:$0xff]  }
  0x19   :  { %936 = vmatpush3.bf16.msra.mxu0 %v1061_v6  ;;  %v1070_v15 = vld [vmem:[#allocation2 + $0x98] sm:$0xff]   ;;  %v1074_v19 = vld [vmem:[#allocation2 + $0xa0] sm:$0xff]   ;;  %v1077_v22 = vld [vmem:[#allocation2 + $0x28] sm:$0xff]  }
  0x1a   :  { %958 = vmatpush3.bf16.msra.mxu1 %v1062_v7  ;;  %937 = vmatprep.subr.bf16.mxu0 %v1063_v8  ;;  %v1078_v23 = vld [vmem:[#allocation2 + $0xa8] sm:$0xff]   ;;  %v1079_v24 = vld [vmem:[#allocation2 + $0x70] sm:$0xff]   ;;  %v1083_v28 = vld [vmem:[#allocation2 + $0x78] sm:$0xff]  }
  0x1b   :  { %959 = vmatprep.subr.bf16.mxu1 %v1064_v9  ;;  %v1080_v25 = vld [vmem:[#allocation2 + $0xf0] sm:$0xff]   ;;  %v1084_v29 = vld [vmem:[#allocation2 + $0xf8] sm:$0xff]   ;;  %v36_v32 = vld [vmem:[%s1259_s0 + $0x8] sm:$0xff] }
  0x1c   :  { %v1081_v26 = vld [vmem:[#allocation2 + $0x30] sm:$0xff]   ;;  %v1085_v30 = vld [vmem:[#allocation2 + $0x38] sm:$0xff]   ;;  %v35_v34 = vld [vmem:[%s1259_s0] sm:$0xff]  ;;  %v44_v35 = vpack.c.bf16 %v36_v32, %v36_v32 }
  0x1d   :  { %938 = vmatpush3.bf16.msra.mxu0 %v1065_v10  ;;  %v1082_v27 = vld [vmem:[#allocation2 + $0xb0] sm:$0xff]   ;;  %v1086_v31 = vld [vmem:[#allocation2 + $0xb8] sm:$0xff]   ;;  %v43_v37 = vpack.c.bf16 %v35_v34, %v35_v34  ;;  %v1087_v40 = vld [vmem:[#allocation2 + $0x140] sm:$0xff]  }
  0x1e   :  { %960 = vmatpush3.bf16.msra.mxu1 %v1066_v11  ;;  %939 = vmatprep.subr.bf16.mxu0 %v1067_v12  ;;  %v38_v33 = vld [vmem:[%s1259_s0 + $0x18] sm:$0xff]  ;;  %v37_v38 = vld [vmem:[%s1259_s0 + $0x10] sm:$0xff]  ;;  %v1088_v41 = vld [vmem:[#allocation2 + $0x1c0] sm:$0xff]  }
  0x1f   :  { %961 = vmatprep.subr.bf16.mxu1 %v1068_v13  ;;  %v46_v36 = vpack.c.bf16 %v38_v33, %v38_v33  ;;  %v45_v39 = vpack.c.bf16 %v37_v38, %v37_v38  ;;  %602 = vmatprep.mubr.bf16.mxu0 %v44_v35  ;;  %v1089_v42 = vld [vmem:[#allocation2 + $0x100] sm:$0xff]   ;;  %v1091_v44 = vld [vmem:[#allocation2 + $0x148] sm:$0xff]   ;;  %v1095_v48 = vld [vmem:[#allocation2 + $0x150] sm:$0xff]  }
  0x20   :  { %v1090_v43 = vld [vmem:[#allocation2 + $0x180] sm:$0xff]   ;;  %v1092_v45 = vld [vmem:[#allocation2 + $0x1c8] sm:$0xff]   ;;  %v1096_v49 = vld [vmem:[#allocation2 + $0x1d0] sm:$0xff]  }
  0x21   :  { %940 = vmatpush3.bf16.msra.mxu0 %v1069_v14  ;;  %642 = vmatprep.mubr.bf16.mxu1 %v46_v36  ;;  %v1093_v46 = vld [vmem:[#allocation2 + $0x108] sm:$0xff]   ;;  %v1097_v50 = vld [vmem:[#allocation2 + $0x110] sm:$0xff]   ;;  %v1099_v52 = vld [vmem:[#allocation2 + $0x158] sm:$0xff]  }
  0x22   :  { %962 = vmatpush3.bf16.msra.mxu1 %v1070_v15  ;;  %941 = vmatprep.subr.bf16.mxu0 %v1071_v16  ;;  %v1094_v47 = vld [vmem:[#allocation2 + $0x188] sm:$0xff]   ;;  %v1098_v51 = vld [vmem:[#allocation2 + $0x190] sm:$0xff]   ;;  %v1100_v53 = vld [vmem:[#allocation2 + $0x1d8] sm:$0xff]  }
  0x23   :  { %963 = vmatprep.subr.bf16.mxu1 %v1072_v17  ;;  %v1101_v54 = vld [vmem:[#allocation2 + $0x118] sm:$0xff]   ;;  %v1103_v56 = vld [vmem:[#allocation2 + $0x160] sm:$0xff]   ;;  %v1107_v60 = vld [vmem:[#allocation2 + $0x168] sm:$0xff]   ;;  %v1158_v17 = vmov 0.0  }
  0x24   :  { %v1102_v55 = vld [vmem:[#allocation2 + $0x198] sm:$0xff]   ;;  %v1104_v57 = vld [vmem:[#allocation2 + $0x1e0] sm:$0xff]   ;;  %v1108_v61 = vld [vmem:[#allocation2 + $0x1e8] sm:$0xff]  }
  0x25   :  { %942 = vmatpush3.bf16.msra.mxu0 %v1073_v18  ;;  %v1105_v58 = vld [vmem:[#allocation2 + $0x120] sm:$0xff]   ;;  %v1109_v62 = vld [vmem:[#allocation2 + $0x128] sm:$0xff]   ;;  %v1111_v0 = vld [vmem:[#allocation2 + $0x170] sm:$0xff]  }
  0x26   :  { %964 = vmatpush3.bf16.msra.mxu1 %v1074_v19  ;;  %943 = vmatprep.subr.bf16.mxu0 %v1075_v20  ;;  %v1106_v59 = vld [vmem:[#allocation2 + $0x1a0] sm:$0xff]   ;;  %v1110_v63 = vld [vmem:[#allocation2 + $0x1a8] sm:$0xff]   ;;  %v1112_v1 = vld [vmem:[#allocation2 + $0x1f0] sm:$0xff]  }
  0x27   :  { %965 = vmatprep.subr.bf16.mxu1 %v1076_v21  ;;  %v1113_v2 = vld [vmem:[#allocation2 + $0x130] sm:$0xff]   ;;  %v1115_v4 = vld [vmem:[#allocation2 + $0x178] sm:$0xff]   ;;  %v40_v8 = vld [vmem:[%s1259_s0 + $0x28] sm:$0xff] }
  0x28   :  { %v1114_v3 = vld [vmem:[#allocation2 + $0x1b0] sm:$0xff]   ;;  %v1116_v5 = vld [vmem:[#allocation2 + $0x1f8] sm:$0xff]   ;;  %v48_v10 = vpack.c.bf16 %v40_v8, %v40_v8  ;;  %v39_v12 = vld [vmem:[%s1259_s0 + $0x20] sm:$0xff] }
  0x29   :  { %944 = vmatpush3.bf16.msra.mxu0 %v1077_v22  ;;  %v1117_v6 = vld [vmem:[#allocation2 + $0x138] sm:$0xff]   ;;  %v41_v13 = vld [vmem:[%s1259_s0 + $0x30] sm:$0xff]  ;;  %v47_v14 = vpack.c.bf16 %v39_v12, %v39_v12  ;;  %v1119_v16 = vld [vmem:[%s1262_s3] sm:$0xff]  }
  0x2a   :  { %966 = vmatpush3.bf16.msra.mxu1 %v1078_v23  ;;  %945 = vmatprep.subr.bf16.mxu0 %v1079_v24  ;;  %v1118_v7 = vld [vmem:[#allocation2 + $0x1b8] sm:$0xff]   ;;  %v49_v15 = vpack.c.bf16 %v41_v13, %v41_v13  ;;  %v1120_v18 = vld [vmem:[%s1262_s3 + $0x8] sm:$0xff]   ;;  %v1121_v19 = vld [vmem:[%s1262_s3 + $0x10] sm:$0xff]  }
  0x2b   :  { %967 = vmatprep.subr.bf16.mxu1 %v1080_v25  ;;  %v42_v9 = vld [vmem:[%s1259_s0 + $0x38] sm:$0xff]  ;;  %v1123_v21 = vld [vmem:[%s1262_s3 + $0x20] sm:$0xff]   ;;  %v1124_v22 = vld [vmem:[%s1262_s3 + $0x28] sm:$0xff]  }
  0x2c   :  { %v50_v11 = vpack.c.bf16 %v42_v9, %v42_v9  ;;  %v1122_v20 = vld [vmem:[%s1262_s3 + $0x18] sm:$0xff]   ;;  %v1125_v23 = vld [vmem:[%s1262_s3 + $0x30] sm:$0xff]  }
  0x2d   :  { %946 = vmatpush3.bf16.msra.mxu0 %v1081_v26  ;;  %v1126_v24 = vld [vmem:[%s1262_s3 + $0x38] sm:$0xff]  }
  0x2e   :  { %968 = vmatpush3.bf16.msra.mxu1 %v1082_v27  ;;  %947 = vmatprep.subr.bf16.mxu0 %v1083_v28  ;;  %v859_v27 = vld [vmem:[%s1261_s2] ss:$0 sm:$0xff] }
  0x2f   :  { %969 = vmatprep.subr.bf16.mxu1 %v1084_v29 }
  0x31   :  { %948 = vmatpush3.bf16.msra.mxu0 %v1085_v30 }
  0x32   :  { %970 = vmatpush3.bf16.msra.mxu1 %v1086_v31  ;;  %977 = vmatprep.subr.bf16.mxu0 %v1087_v40 }
  0x33   :  { %999 = vmatprep.subr.bf16.mxu1 %v1088_v41 }
  0x34   :  { %603 = vmatmul.mubr.bf16.vlgmr.msra.gmra.mrb[0].mxu0 %v43_v37 }
  0x35   :  { %643 = vmatmul.mubr.bf16.vlgmr.msra.gmra.mrb[0].mxu1 %v45_v39  ;;  %978 = vmatpush3.bf16.msra.mxu0 %v1089_v42 }
  0x36   :  { %1000 = vmatpush3.bf16.msra.mxu1 %v1090_v43  ;;  %979 = vmatprep.subr.bf16.mxu0 %v1091_v44 }
  0x37   :  { %1001 = vmatprep.subr.bf16.mxu1 %v1092_v45  ;;  %682 = vmatprep.mubr.bf16.mxu0 %v48_v10 }
  0x38   :  { %722 = vmatprep.mubr.bf16.mxu1 %v50_v11 }
  0x39   :  { %980 = vmatpush3.bf16.msra.mxu0 %v1093_v46 }
  0x3a   :  { %1002 = vmatpush3.bf16.msra.mxu1 %v1094_v47  ;;  %981 = vmatprep.subr.bf16.mxu0 %v1095_v48 }
  0x3b   :  { %1003 = vmatprep.subr.bf16.mxu1 %v1096_v49 }
  0x3d   :  { %982 = vmatpush3.bf16.msra.mxu0 %v1097_v50 }
  0x3e   :  { %1004 = vmatpush3.bf16.msra.mxu1 %v1098_v51  ;;  %983 = vmatprep.subr.bf16.mxu0 %v1099_v52  ;;  %v924_v52 = vld [vmem:[%s1263_s4] ss:$0 sm:$0xff] }
  0x3f   :  { %1005 = vmatprep.subr.bf16.mxu1 %v1100_v53 }
  0x41   :  { %984 = vmatpush3.bf16.msra.mxu0 %v1101_v54 }
  0x42   :  { %1006 = vmatpush3.bf16.msra.mxu1 %v1102_v55  ;;  %985 = vmatprep.subr.bf16.mxu0 %v1103_v56 }
  0x43   :  { %1007 = vmatprep.subr.bf16.mxu1 %v1104_v57 }
  0x45   :  { %986 = vmatpush3.bf16.msra.mxu0 %v1105_v58 }
  0x46   :  { %1008 = vmatpush3.bf16.msra.mxu1 %v1106_v59  ;;  %987 = vmatprep.subr.bf16.mxu0 %v1107_v60 }
  0x47   :  { %1009 = vmatprep.subr.bf16.mxu1 %v1108_v61 }
  0x49   :  { %988 = vmatpush3.bf16.msra.mxu0 %v1109_v62 }
  0x4a   :  { %1010 = vmatpush3.bf16.msra.mxu1 %v1110_v63  ;;  %989 = vmatprep.subr.bf16.mxu0 %v1111_v0 }
  0x4b   :  { %1011 = vmatprep.subr.bf16.mxu1 %v1112_v1 }
  0x4d   :  { %990 = vmatpush3.bf16.msra.mxu0 %v1113_v2 }
  0x4e   :  { %1012 = vmatpush3.bf16.msra.mxu1 %v1114_v3  ;;  %991 = vmatprep.subr.bf16.mxu0 %v1115_v4 }
  0x4f   :  { %1013 = vmatprep.subr.bf16.mxu1 %v1116_v5 }
  0x51   :  { %992 = vmatpush3.bf16.msra.mxu0 %v1117_v6 }
  0x52   :  { %1014 = vmatpush3.bf16.msra.mxu1 %v1118_v7  ;;  %1030 = vmatprep.subr.bf16.mxu0 %v1158_v17 }
  0x54   :  { %683 = vmatmul.mubr.bf16.vlgmr.msra.gmra.mrb[4].mxu0 %v47_v14 }
  0x55   :  { %723 = vmatmul.mubr.bf16.vlgmr.msra.gmra.mrb[4].mxu1 %v49_v15  ;;  %1031 = vmatpush3.bf16.msra.mxu0 %v1119_v16 }
  0x56   :  { %1032 = vmatprep.subr.bf16.mxu0 %v1158_v17  ;;  %1046 = vmatprep.mubr.msk.bf16.mxu0 %vm1159_vm0, %v1158_v17 }
  0x59   :  { %1033 = vmatpush3.bf16.msra.mxu0 %v1120_v18 }
  0x5a   :  { %1034 = vmatprep.subr.bf16.mxu0 %v1158_v17 }
  0x5d   :  { %1035 = vmatpush3.bf16.msra.mxu0 %v1121_v19 }
  0x5e   :  { %1036 = vmatprep.subr.bf16.mxu0 %v1158_v17 }
  0x61   :  { %1037 = vmatpush3.bf16.msra.mxu0 %v1122_v20 }
  0x62   :  { %1038 = vmatprep.subr.bf16.mxu0 %v1158_v17 }
  0x65   :  { %1039 = vmatpush3.bf16.msra.mxu0 %v1123_v21 }
  0x66   :  { %1040 = vmatprep.subr.bf16.mxu0 %v1158_v17 }
  0x69   :  { %1041 = vmatpush3.bf16.msra.mxu0 %v1124_v22 }
  0x6a   :  { %1042 = vmatprep.subr.bf16.mxu0 %v1158_v17 }
  0x6d   :  { %1043 = vmatpush3.bf16.msra.mxu0 %v1125_v23 }
  0x6e   :  { %1044 = vmatprep.subr.bf16.mxu0 %v1158_v17 }
  0x71   :  { %1045 = vmatpush3.bf16.msra.mxu0 %v1126_v24 }
 0x107   :  { %v949_v25 = vpop.f32.mrb[0].mxu0 }
 0x108   :  { %v971_v26 = vpop.f32.mrb[0].mxu1  ;;  %v950_v28 = vpop.f32.mrb[1].mxu0 }
 0x109   :  { %v972_v29 = vpop.f32.mrb[1].mxu1  ;;  %v951_v30 = vadd.f32 %v950_v28, %v949_v25  ;;  %v952_v32 = vpop.f32.mrb[2].mxu0 }
 0x10a   :  { %v973_v31 = vadd.f32 %v972_v29, %v971_v26  ;;  %v974_v33 = vpop.f32.mrb[2].mxu1  ;;  %v953_v34 = vpop.f32.mrb[3].mxu0 }
 0x10b   :  { %v975_v35 = vpop.f32.mrb[3].mxu1  ;;  %v605_v36 = vadd.f32 %v951_v30, %v859_v27 }
 0x10d   :  { %v645_v37 = vadd.f32 %v973_v31, %v605_v36 }
 0x127   :  { %v993_v38 = vpop.f32.mrb[4].mxu0 }
 0x128   :  { %v1015_v39 = vpop.f32.mrb[4].mxu1  ;;  %v994_v40 = vpop.f32.mrb[5].mxu0 }
 0x129   :  { %v995_v41 = vadd.f32 %v994_v40, %v993_v38  ;;  %v1016_v42 = vpop.f32.mrb[5].mxu1  ;;  %v996_v43 = vpop.f32.mrb[6].mxu0 }
 0x12a   :  { %v1017_v44 = vadd.f32 %v1016_v42, %v1015_v39  ;;  %v1018_v45 = vpop.f32.mrb[6].mxu1  ;;  %v997_v46 = vpop.f32.mrb[7].mxu0 }
 0x12b   :  { %v685_v47 = vadd.f32 %v995_v41, %v645_v37  ;;  %v1019_v48 = vpop.f32.mrb[7].mxu1 }
 0x12d   :  { %v725_v49 = vadd.f32 %v1017_v44, %v685_v47 }
 0x12f   :  { %v730_v50 = vmax.f32 %v725_v49, 0.0 }
 0x131   :  { %v731_v51 = vpack.c.bf16 %v730_v50, %v730_v50 }
 0x133   :  { %1047 = vmatmul.mubr.bf16.vlgmr.msra.gmra.mrb[8].mxu0 %v731_v51 }
 0x206   :  { %v837_v53 = vpop.f32.mrb[8].mxu0 }
 0x207   :  { %v838_v54 = vadd.f32 %v924_v52, %v837_v53  ;;  %v1048_v55 = vpop.f32.mrb[9].mxu0 }
 0x208   :  { %v840_v56 = vpop.f32.mrb[10].mxu0 }
 0x209   :  { %843 = vmax.xlane.f32.xlu0 %v838_v54  ;;  %v1049_v57 = vpop.f32.mrb[11].mxu0 }
 0x296   :  { %v844_v58 = vpop.xlane.xlu0 %843 }
 0x297   :  { %v845_v59 = vsub.f32 %v838_v54, %v844_v58 }
 0x299   :  { %v846_v60 = vmul.f32 1.442695, %v845_v59 }
 0x29b   :  { %1127 = vpow2.f32 %v846_v60 }
 0x2a5   :  { %v1128_v61 = vpop.eup %1127 }
 0x2a6   :  { %848 = vadd.xlane.f32.xlu0 %v1128_v61 }
 0x333   :  { %v849_v62 = vpop.xlane.xlu0 %848 }
 0x334   :  { %1129 = vlog2.f32 %v849_v62 }
 0x33e   :  { %v1130_v63 = vpop.eup %1129 }
 0x33f   :  { %v851_v0 = vmul.f32 0.6931472, %v1130_v63 }
 0x341   :  { %v852_v1 = vsub.f32 %v845_v59, %v851_v0 }
 0x343   :  { %853 = vst [vmem:[%s1264_s5] sm:$0xff] %v852_v1 }
 0x344   :  { %858 = vsyncpa [#allocation3], 1 }

</bundles_post_ra>
